<compile_context>
chip_gen: v7x
topology: tpu7x:2x2x1
jax: 0.10.0
libtpu: 0.0.40
codegen_flags: <defaults>
</compile_context>

<pallas_src>
import jax
import jax.numpy as jnp
from jax.experimental import pallas as pl
from jax.experimental.pallas import tpu as pltpu


def _round_up(x, m):
    return ((x + m - 1) // m) * m


def _mlp_kernel(x_ref,
                w0_ref, b0_ref,
                w1_ref, b1_ref,
                w2_ref, b2_ref,
                w3_ref, b3_ref,
                w4_ref, b4_ref,
                o_ref):
    """Fused 5-layer MLP with tanh (5 MXU matmuls, f32 accumulate/activate)."""
    cdt = w0_ref.dtype  # MXU input dtype (bf16 or f32)
    h = x_ref[...]
    for w_ref, b_ref in ((w0_ref, b0_ref), (w1_ref, b1_ref), (w2_ref, b2_ref),
                         (w3_ref, b3_ref), (w4_ref, b4_ref)):
        acc = jnp.dot(h.astype(cdt), w_ref[...],
                      preferred_element_type=jnp.float32)
        h = jnp.tanh(acc + b_ref[...])           # bias-add + tanh in f32
    o_ref[...] = h.astype(o_ref.dtype)


def classifier_forward(x, params, *, tile_b=256, use_bf16=True):
    """x: [B, 784] float32.  params: W0..W4 ([out, in]) and b0..b4 ([out]).

    Returns [B, hidden] float32, matching tanh(L4(...tanh(L0(x))...)).
    """
    B, D_in = x.shape
    H = params["W0"].shape[0]
    assert params["W0"].shape[1] == D_in

    cdt = jnp.bfloat16 if use_bf16 else jnp.float32
    sublane = 16 if use_bf16 else 8

    # Lane-dense padded dims.
    D_pad = _round_up(D_in, 128)            # 784 -> 896
    H_pad = _round_up(max(H, 128), 128)     # e.g. 32 -> 128

    # Big batch tile, but never larger than the (padded) batch itself.
    tile_b = max(sublane, _round_up(min(tile_b, B), sublane))
    B_pad = _round_up(B, tile_b)
    grid = (B_pad // tile_b,)

    # ---- host-side zero padding / casting (padding is inert end-to-end) ----
    xp = jnp.pad(x, ((0, B_pad - B), (0, D_pad - D_in))).astype(cdt)

    def pad_w(w, rows, cols):
        wt = w.T  # [in, out]
        return jnp.pad(wt, ((0, rows - wt.shape[0]),
                            (0, cols - wt.shape[1]))).astype(cdt)

    def pad_b(b):
        return jnp.pad(b.reshape(1, -1),
                       ((0, 0), (0, H_pad - b.shape[0]))).astype(jnp.float32)

    w0 = pad_w(params["W0"], D_pad, H_pad)
    w1 = pad_w(params["W1"], H_pad, H_pad)
    w2 = pad_w(params["W2"], H_pad, H_pad)
    w3 = pad_w(params["W3"], H_pad, H_pad)
    w4 = pad_w(params["W4"], H_pad, H_pad)
    b0, b1, b2, b3, b4 = (pad_b(params[f"b{i}"]) for i in range(5))

    def full(shape):
        # Constant-index full-extent block: weights resident across all steps.
        # (Small enough here that default double-buffering fits easily; for
        #  very large H on v7x, drop to bf16 / single-buffer the weight specs.)
        return pl.BlockSpec(shape, lambda i: (0, 0))

    itemsize = jnp.dtype(cdt).itemsize
    w_bytes = (D_pad * H_pad + 4 * H_pad * H_pad) * itemsize + 5 * H_pad * 4
    cost = pl.CostEstimate(
        flops=2 * B_pad * (D_pad * H_pad + 4 * H_pad * H_pad),
        transcendentals=5 * B_pad * H_pad,
        bytes_accessed=B_pad * D_pad * itemsize + B_pad * H_pad * 4 + w_bytes,
    )

    out = pl.pallas_call(
        _mlp_kernel,
        out_shape=jax.ShapeDtypeStruct((B_pad, H_pad), jnp.float32),
        grid=grid,
        in_specs=[
            pl.BlockSpec((tile_b, D_pad), lambda i: (i, 0)),   # x tile
            full((D_pad, H_pad)), full((1, H_pad)),            # layer 0
            full((H_pad, H_pad)), full((1, H_pad)),            # layer 1
            full((H_pad, H_pad)), full((1, H_pad)),            # layer 2
            full((H_pad, H_pad)), full((1, H_pad)),            # layer 3
            full((H_pad, H_pad)), full((1, H_pad)),            # layer 4
        ],
        out_specs=pl.BlockSpec((tile_b, H_pad), lambda i: (i, 0)),
        compiler_params=pltpu.CompilerParams(
            dimension_semantics=("parallel",),     # megacore-shard batch tiles
            vmem_limit_bytes=64 * 1024 * 1024,
        ),
        cost_estimate=cost,
    )(xp, w0, b0, w1, b1, w2, b2, w3, b3, w4, b4)

    return out[:B, :H]


def init_params(key, hidden):
    """Deterministic parameter init matching the PyTorch layer shapes."""
    dims = [(hidden, 784), (hidden, hidden), (hidden, hidden),
            (hidden, hidden), (hidden, hidden)]
    params = {}
    for i, (out_d, in_d) in enumerate(dims):
        key, kw, kb = jax.random.split(key, 3)
        bound = 1.0 / jnp.sqrt(in_d)
        params[f"W{i}"] = jax.random.uniform(
            kw, (out_d, in_d), jnp.float32, -bound, bound)
        params[f"b{i}"] = jax.random.uniform(
            kb, (out_d,), jnp.float32, -bound, bound)
    return params


def _reference_forward(x, params):
    """Plain-JAX reference reproducing the PyTorch forward exactly."""
    h = x
    for i in range(5):
        h = jnp.tanh(h @ params[f"W{i}"].T + params[f"b{i}"])
    return h


if __name__ == "__main__":
    key = jax.random.PRNGKey(0)
    k_x, k_p, k_x2 = jax.random.split(key, 3)

    B, HIDDEN = 8, 32
    x = jax.random.normal(k_x, (B, 784), jnp.float32)
    params = init_params(k_p, HIDDEN)
    ref = _reference_forward(x, params)

    # 1) f32-MXU path: tight check vs the reference.
    out_f32 = jax.block_until_ready(
        classifier_forward(x, params, use_bf16=False))
    assert out_f32.shape == (B, HIDDEN)
    assert jnp.allclose(out_f32, ref, atol=1e-5, rtol=1e-5), "f32 mismatch"

    # 2) Default perf config (bf16 MXU inputs, f32 accumulation/activation).
    out_bf16 = jax.block_until_ready(classifier_forward(x, params))
    assert out_bf16.shape == (B, HIDDEN)
    assert jnp.allclose(out_bf16, ref, atol=3e-2, rtol=0), "bf16 mismatch"

    # 3) Multi-tile grid (exercises batch tiling + padding/slicing paths).
    B2 = 512
    x2 = jax.random.normal(k_x2, (B2, 784), jnp.float32)
    ref2 = _reference_forward(x2, params)
    out2 = jax.block_until_ready(
        classifier_forward(x2, params, tile_b=256, use_bf16=False))
    assert out2.shape == (B2, HIDDEN)
    assert jnp.allclose(out2, ref2, atol=1e-5, rtol=1e-5), "tiled mismatch"

    print("KERNEL_OK")
</pallas_src>

<mosaic_0001>
module attributes {stable_mosaic.version = 11 : i64} {
  func.func @_mlp_kernel(%arg0: i32, %arg1: memref<8x896xf32, #tpu.memory_space<vmem>>, %arg2: memref<896x128xf32, #tpu.memory_space<vmem>>, %arg3: memref<1x128xf32, #tpu.memory_space<vmem>>, %arg4: memref<128x128xf32, #tpu.memory_space<vmem>>, %arg5: memref<1x128xf32, #tpu.memory_space<vmem>>, %arg6: memref<128x128xf32, #tpu.memory_space<vmem>>, %arg7: memref<1x128xf32, #tpu.memory_space<vmem>>, %arg8: memref<128x128xf32, #tpu.memory_space<vmem>>, %arg9: memref<1x128xf32, #tpu.memory_space<vmem>>, %arg10: memref<128x128xf32, #tpu.memory_space<vmem>>, %arg11: memref<1x128xf32, #tpu.memory_space<vmem>>, %arg12: memref<8x128xf32, #tpu.memory_space<vmem>>) attributes {dimension_semantics = [#tpu.dimension_semantics<parallel>], iteration_bounds = array<i64: 1>, scalar_prefetch = 0 : i64, scratch_operands = 0 : i64, tpu.core_type = #tpu.core_type<tc>, window_params = [{transform_indices = @transform_0, window_bounds = array<i64: 8, 896>}, {pipeline_mode = #tpu.pipeline_mode<synchronous>, transform_indices = @transform_1, window_bounds = array<i64: 896, 128>}, {pipeline_mode = #tpu.pipeline_mode<synchronous>, transform_indices = @transform_2, window_bounds = array<i64: 1, 128>}, {pipeline_mode = #tpu.pipeline_mode<synchronous>, transform_indices = @transform_3, window_bounds = array<i64: 128, 128>}, {pipeline_mode = #tpu.pipeline_mode<synchronous>, transform_indices = @transform_4, window_bounds = array<i64: 1, 128>}, {pipeline_mode = #tpu.pipeline_mode<synchronous>, transform_indices = @transform_5, window_bounds = array<i64: 128, 128>}, {pipeline_mode = #tpu.pipeline_mode<synchronous>, transform_indices = @transform_6, window_bounds = array<i64: 1, 128>}, {pipeline_mode = #tpu.pipeline_mode<synchronous>, transform_indices = @transform_7, window_bounds = array<i64: 128, 128>}, {pipeline_mode = #tpu.pipeline_mode<synchronous>, transform_indices = @transform_8, window_bounds = array<i64: 1, 128>}, {pipeline_mode = #tpu.pipeline_mode<synchronous>, transform_indices = @transform_9, window_bounds = array<i64: 128, 128>}, {pipeline_mode = #tpu.pipeline_mode<synchronous>, transform_indices = @transform_10, window_bounds = array<i64: 1, 128>}, {transform_indices = @transform_11, window_bounds = array<i64: 8, 128>}]} {
    %c0 = arith.constant 0 : index
    %c0_0 = arith.constant 0 : index
    %0 = vector.load %arg1[%c0, %c0_0] : memref<8x896xf32, #tpu.memory_space<vmem>>, vector<8x896xf32>
    %c0_1 = arith.constant 0 : index
    %c0_2 = arith.constant 0 : index
    %1 = vector.load %arg2[%c0_1, %c0_2] : memref<896x128xf32, #tpu.memory_space<vmem>>, vector<896x128xf32>
    %cst = arith.constant dense<0.000000e+00> : vector<8x128xf32>
    %2 = tpu.matmul %0, %1, %cst {dimension_numbers = #tpu.dot_dimension_numbers<[1], [0], [0], [1], [0, 0, 1, 1], [], []>} : vector<8x896xf32>, vector<896x128xf32>, vector<8x128xf32> -> vector<8x128xf32>
    %c0_3 = arith.constant 0 : index
    %c0_4 = arith.constant 0 : index
    %3 = vector.load %arg3[%c0_3, %c0_4] : memref<1x128xf32, #tpu.memory_space<vmem>>, vector<1x128xf32>
    %4 = vector.broadcast %3 : vector<1x128xf32> to vector<8x128xf32>
    %5 = arith.addf %2, %4 : vector<8x128xf32>
    %6 = math.tanh %5 : vector<8x128xf32>
    %c0_5 = arith.constant 0 : index
    %c0_6 = arith.constant 0 : index
    %7 = vector.load %arg4[%c0_5, %c0_6] : memref<128x128xf32, #tpu.memory_space<vmem>>, vector<128x128xf32>
    %cst_7 = arith.constant dense<0.000000e+00> : vector<8x128xf32>
    %8 = tpu.matmul %6, %7, %cst_7 {dimension_numbers = #tpu.dot_dimension_numbers<[1], [0], [0], [1], [0, 0, 1, 1], [], []>} : vector<8x128xf32>, vector<128x128xf32>, vector<8x128xf32> -> vector<8x128xf32>
    %c0_8 = arith.constant 0 : index
    %c0_9 = arith.constant 0 : index
    %9 = vector.load %arg5[%c0_8, %c0_9] : memref<1x128xf32, #tpu.memory_space<vmem>>, vector<1x128xf32>
    %10 = vector.broadcast %9 : vector<1x128xf32> to vector<8x128xf32>
    %11 = arith.addf %8, %10 : vector<8x128xf32>
    %12 = math.tanh %11 : vector<8x128xf32>
    %c0_10 = arith.constant 0 : index
    %c0_11 = arith.constant 0 : index
    %13 = vector.load %arg6[%c0_10, %c0_11] : memref<128x128xf32, #tpu.memory_space<vmem>>, vector<128x128xf32>
    %cst_12 = arith.constant dense<0.000000e+00> : vector<8x128xf32>
    %14 = tpu.matmul %12, %13, %cst_12 {dimension_numbers = #tpu.dot_dimension_numbers<[1], [0], [0], [1], [0, 0, 1, 1], [], []>} : vector<8x128xf32>, vector<128x128xf32>, vector<8x128xf32> -> vector<8x128xf32>
    %c0_13 = arith.constant 0 : index
    %c0_14 = arith.constant 0 : index
    %15 = vector.load %arg7[%c0_13, %c0_14] : memref<1x128xf32, #tpu.memory_space<vmem>>, vector<1x128xf32>
    %16 = vector.broadcast %15 : vector<1x128xf32> to vector<8x128xf32>
    %17 = arith.addf %14, %16 : vector<8x128xf32>
    %18 = math.tanh %17 : vector<8x128xf32>
    %c0_15 = arith.constant 0 : index
    %c0_16 = arith.constant 0 : index
    %19 = vector.load %arg8[%c0_15, %c0_16] : memref<128x128xf32, #tpu.memory_space<vmem>>, vector<128x128xf32>
    %cst_17 = arith.constant dense<0.000000e+00> : vector<8x128xf32>
    %20 = tpu.matmul %18, %19, %cst_17 {dimension_numbers = #tpu.dot_dimension_numbers<[1], [0], [0], [1], [0, 0, 1, 1], [], []>} : vector<8x128xf32>, vector<128x128xf32>, vector<8x128xf32> -> vector<8x128xf32>
    %c0_18 = arith.constant 0 : index
    %c0_19 = arith.constant 0 : index
    %21 = vector.load %arg9[%c0_18, %c0_19] : memref<1x128xf32, #tpu.memory_space<vmem>>, vector<1x128xf32>
    %22 = vector.broadcast %21 : vector<1x128xf32> to vector<8x128xf32>
    %23 = arith.addf %20, %22 : vector<8x128xf32>
    %24 = math.tanh %23 : vector<8x128xf32>
    %c0_20 = arith.constant 0 : index
    %c0_21 = arith.constant 0 : index
    %25 = vector.load %arg10[%c0_20, %c0_21] : memref<128x128xf32, #tpu.memory_space<vmem>>, vector<128x128xf32>
    %cst_22 = arith.constant dense<0.000000e+00> : vector<8x128xf32>
    %26 = tpu.matmul %24, %25, %cst_22 {dimension_numbers = #tpu.dot_dimension_numbers<[1], [0], [0], [1], [0, 0, 1, 1], [], []>} : vector<8x128xf32>, vector<128x128xf32>, vector<8x128xf32> -> vector<8x128xf32>
    %c0_23 = arith.constant 0 : index
    %c0_24 = arith.constant 0 : index
    %27 = vector.load %arg11[%c0_23, %c0_24] : memref<1x128xf32, #tpu.memory_space<vmem>>, vector<1x128xf32>
    %28 = vector.broadcast %27 : vector<1x128xf32> to vector<8x128xf32>
    %29 = arith.addf %26, %28 : vector<8x128xf32>
    %30 = math.tanh %29 : vector<8x128xf32>
    %c0_25 = arith.constant 0 : index
    %c0_26 = arith.constant 0 : index
    %31 = vector.load %arg12[%c0_25, %c0_26] : memref<8x128xf32, #tpu.memory_space<vmem>>, vector<8x128xf32>
    tpu.vector_store %arg12[%c0_25, %c0_26], %30 {strides = array<i32>} : memref<8x128xf32, #tpu.memory_space<vmem>>, vector<8x128xf32>,
    return
  }
  func.func @transform_0(%arg0: i32) -> (i32, i32) {
    %c0_i32 = arith.constant 0 : i32
    %c0_i32_0 = arith.constant 0 : i32
    return %arg0, %c0_i32 : i32, i32
  }
  func.func @transform_1(%arg0: i32) -> (i32, i32) {
    %c0_i32 = arith.constant 0 : i32
    %c0_i32_0 = arith.constant 0 : i32
    %c0_i32_1 = arith.constant 0 : i32
    return %c0_i32, %c0_i32_0 : i32, i32
  }
  func.func @transform_2(%arg0: i32) -> (i32, i32) {
    %c0_i32 = arith.constant 0 : i32
    %c0_i32_0 = arith.constant 0 : i32
    %c0_i32_1 = arith.constant 0 : i32
    return %c0_i32, %c0_i32_0 : i32, i32
  }
  func.func @transform_3(%arg0: i32) -> (i32, i32) {
    %c0_i32 = arith.constant 0 : i32
    %c0_i32_0 = arith.constant 0 : i32
    %c0_i32_1 = arith.constant 0 : i32
    return %c0_i32, %c0_i32_0 : i32, i32
  }
  func.func @transform_4(%arg0: i32) -> (i32, i32) {
    %c0_i32 = arith.constant 0 : i32
    %c0_i32_0 = arith.constant 0 : i32
    %c0_i32_1 = arith.constant 0 : i32
    return %c0_i32, %c0_i32_0 : i32, i32
  }
  func.func @transform_5(%arg0: i32) -> (i32, i32) {
    %c0_i32 = arith.constant 0 : i32
    %c0_i32_0 = arith.constant 0 : i32
    %c0_i32_1 = arith.constant 0 : i32
    return %c0_i32, %c0_i32_0 : i32, i32
  }
  func.func @transform_6(%arg0: i32) -> (i32, i32) {
    %c0_i32 = arith.constant 0 : i32
    %c0_i32_0 = arith.constant 0 : i32
    %c0_i32_1 = arith.constant 0 : i32
    return %c0_i32, %c0_i32_0 : i32, i32
  }
  func.func @transform_7(%arg0: i32) -> (i32, i32) {
    %c0_i32 = arith.constant 0 : i32
    %c0_i32_0 = arith.constant 0 : i32
    %c0_i32_1 = arith.constant 0 : i32
    return %c0_i32, %c0_i32_0 : i32, i32
  }
  func.func @transform_8(%arg0: i32) -> (i32, i32) {
    %c0_i32 = arith.constant 0 : i32
    %c0_i32_0 = arith.constant 0 : i32
    %c0_i32_1 = arith.constant 0 : i32
    return %c0_i32, %c0_i32_0 : i32, i32
  }
  func.func @transform_9(%arg0: i32) -> (i32, i32) {
    %c0_i32 = arith.constant 0 : i32
    %c0_i32_0 = arith.constant 0 : i32
    %c0_i32_1 = arith.constant 0 : i32
    return %c0_i32, %c0_i32_0 : i32, i32
  }
  func.func @transform_10(%arg0: i32) -> (i32, i32) {
    %c0_i32 = arith.constant 0 : i32
    %c0_i32_0 = arith.constant 0 : i32
    %c0_i32_1 = arith.constant 0 : i32
    return %c0_i32, %c0_i32_0 : i32, i32
  }
  func.func @transform_11(%arg0: i32) -> (i32, i32) {
    %c0_i32 = arith.constant 0 : i32
    %c0_i32_0 = arith.constant 0 : i32
    return %arg0, %c0_i32 : i32, i32
  }
}

</mosaic_0001>

<bundles_post_ra>
// kernel: tpu_custom_call.1
= control target key start
LH: loop header
LB: loop body
LE: loop exit
PB: predicated region body
PF: predicated region fallthrough
CT: control target
= control target key end

     0   :  { %16 = vsyncpa [#allocation3], 0  ;;  %s2157_s0 = inlined_call_operand.hbm [shape: f32[8,896], index: 0, kind: input, shape index: {}]   ;;  %s2158_s1 = inlined_call_operand.hbm [shape: f32[896,128], index: 1, kind: input, shape index: {}]   ;;  %s2159_s2 = inlined_call_operand.hbm [shape: f32[1,128], index: 2, kind: input, shape index: {}]   ;;  %s2160_s3 = inlined_call_operand.hbm [shape: f32[128,128], index: 3, kind: input, shape index: {}]   ;;  %s2161_s4 = inlined_call_operand.hbm [shape: f32[1,128], index: 4, kind: input, shape index: {}]   ;;  %s2162_s5 = inlined_call_operand.hbm [shape: f32[128,128], index: 5, kind: input, shape index: {}]   ;;  %s2163_s6 = inlined_call_operand.hbm [shape: f32[1,128], index: 6, kind: input, shape index: {}]   ;;  %s2164_s7 = inlined_call_operand.hbm [shape: f32[128,128], index: 7, kind: input, shape index: {}]   ;;  %s2165_s8 = inlined_call_operand.hbm [shape: f32[1,128], index: 8, kind: input, shape index: {}]   ;;  %s2166_s9 = inlined_call_operand.hbm [shape: f32[128,128], index: 9, kind: input, shape index: {}]   ;;  %s2167_s10 = inlined_call_operand.hbm [shape: f32[1,128], index: 10, kind: input, shape index: {}]   ;;  %s2168_s11 = inlined_call_operand.hbm [shape: f32[8,128], index: 11, kind: output, shape index: {}]  }
   0x1   :  { %17 = vsyncpa [#allocation6], 0 }
   0x2   :  { %18 = vsyncpa [#allocation9], 0 }
   0x3   :  { %19 = vsyncpa [#allocation12], 0 }
   0x4   :  { %20 = vsyncpa [#allocation15], 0 }
   0x5   :  { %21 = vsyncpa [#allocation18], 0 }
   0x6   :  { %22 = vsyncpa [#allocation4], 0  ;;  %s1871_s17 = smov [#allocation5]   ;;  %s1593_s21 = scalar_lea.hbm %s2158_s1, 14336 }
   0x7   :  { %s38_s18 = sshll.u32 %s1871_s17, 4  ;;  %p1594_p0 = scmp.ne.s32.totalorder %s2158_s1, %s1593_s21  ;;  %s39_s18 = int_to_ptr.vmem [resolvable:$true] %s38_s18 }
   0x8   :  { %p1597_p1 = scmp.lt.u32.totalorder %s1593_s21, %s2158_s1 }
   0xa   :  { %p1599_p2 = pnand %p1597_p1, %p1594_p0 }
   0xc   :  { %1602 = shalt.err (!%p1599_p2)
}
   0xd   :  { %s1603_s26 = scalar_lea.vmem %s39_s18, 14336  ;;  %p1608_p4 = scmp.lt.s32.totalorder %s39_s18, %s39_s18 }
   0xe   :  { %p1604_p3 = scmp.ne.s32.totalorder %s39_s18, %s1603_s26  ;;  %p1609_p5 = scmp.lt.s32.totalorder %s1603_s26, %s1603_s26 }
  0x10   :  { %p1610_p6 = por %p1609_p5, %p1608_p4 }
  0x12   :  { %p1611_p7 = pnand %p1610_p6, %p1604_p3 }
  0x14   :  { %1614 = shalt.err (!%p1611_p7)
}
  0x15   :  { %s1872_s27 = smov 128   ;;  %s1873_s28 = smov 8  }
  0x16   :  { %44 = dma.hbm_to_vmem [thread:$0]  %s2158_s1, 14336, %s39_s18, [#allocation6], %s1872_s27, %s1872_s27, %s1873_s28  }
  0x17   :  { %s1874_s12 = smov [#allocation8]   ;;  %s1875_s14 = smov [#allocation11]  }
  0x18   :  { %s60_s13 = sshll.u32 %s1874_s12, 4  ;;  %s82_s15 = sshll.u32 %s1875_s14, 4  ;;  %s61_s13 = int_to_ptr.vmem [resolvable:$true] %s60_s13  ;;  %s83_s15 = int_to_ptr.vmem [resolvable:$true] %s82_s15 }
  0x19   :  { %s1615_s19 = scalar_lea.hbm %s2160_s3, 2048 }
  0x1a   :  { %p1616_p8 = scmp.ne.s32.totalorder %s2160_s3, %s1615_s19  ;;  %p1619_p9 = scmp.lt.u32.totalorder %s1615_s19, %s2160_s3 }
  0x1c   :  { %p1621_p10 = pnand %p1619_p9, %p1616_p8 }
  0x1e   :  { %1624 = shalt.err (!%p1621_p10)
}
  0x1f   :  { %s1625_s1 = scalar_lea.vmem %s61_s13, 2048  ;;  %p1630_p12 = scmp.lt.s32.totalorder %s61_s13, %s61_s13 }
  0x20   :  { %p1626_p11 = scmp.ne.s32.totalorder %s61_s13, %s1625_s1  ;;  %p1631_p13 = scmp.lt.s32.totalorder %s1625_s1, %s1625_s1 }
  0x22   :  { %p1632_p0 = por %p1631_p13, %p1630_p12 }
  0x24   :  { %p1633_p1 = pnand %p1632_p0, %p1626_p11 }
  0x26   :  { %1636 = shalt.err (!%p1633_p1)
}
  0x27   :  { %66 = dma.hbm_to_vmem [thread:$0]  %s2160_s3, 2048, %s61_s13, [#allocation9], %s1872_s27, %s1872_s27, %s1873_s28  }
  0x28   :  { %s1637_s29 = scalar_lea.hbm %s2162_s5, 2048 }
  0x29   :  { %p1638_p2 = scmp.ne.s32.totalorder %s2162_s5, %s1637_s29  ;;  %p1641_p3 = scmp.lt.u32.totalorder %s1637_s29, %s2162_s5 }
  0x2b   :  { %p1643_p4 = pnand %p1641_p3, %p1638_p2 }
  0x2d   :  { %1646 = shalt.err (!%p1643_p4)
}
  0x2e   :  { %s1647_s17 = scalar_lea.vmem %s83_s15, 2048  ;;  %p1652_p6 = scmp.lt.s32.totalorder %s83_s15, %s83_s15 }
  0x2f   :  { %p1648_p5 = scmp.ne.s32.totalorder %s83_s15, %s1647_s17  ;;  %p1653_p7 = scmp.lt.s32.totalorder %s1647_s17, %s1647_s17 }
  0x31   :  { %p1654_p8 = por %p1653_p7, %p1652_p6 }
  0x33   :  { %p1655_p9 = pnand %p1654_p8, %p1648_p5 }
  0x35   :  { %1658 = shalt.err (!%p1655_p9)
}
  0x36   :  { %88 = dma.hbm_to_vmem [thread:$0]  %s2162_s5, 2048, %s83_s15, [#allocation12], %s1872_s27, %s1872_s27, %s1873_s28  }
  0x37   :  { %s1876_s19 = smov [#allocation14]   ;;  %s1877_s21 = smov [#allocation17]  }
  0x38   :  { %s104_s20 = sshll.u32 %s1876_s19, 4  ;;  %s126_s22 = sshll.u32 %s1877_s21, 4  ;;  %s105_s20 = int_to_ptr.vmem [resolvable:$true] %s104_s20  ;;  %s127_s22 = int_to_ptr.vmem [resolvable:$true] %s126_s22 }
  0x39   :  { %s1659_s18 = scalar_lea.hbm %s2164_s7, 2048 }
  0x3a   :  { %p1660_p10 = scmp.ne.s32.totalorder %s2164_s7, %s1659_s18  ;;  %p1663_p11 = scmp.lt.u32.totalorder %s1659_s18, %s2164_s7 }
  0x3c   :  { %p1665_p12 = pnand %p1663_p11, %p1660_p10 }
  0x3e   :  { %1668 = shalt.err (!%p1665_p12)
}
  0x3f   :  { %s1669_s5 = scalar_lea.vmem %s105_s20, 2048  ;;  %p1674_p0 = scmp.lt.s32.totalorder %s105_s20, %s105_s20 }
  0x40   :  { %p1670_p13 = scmp.ne.s32.totalorder %s105_s20, %s1669_s5  ;;  %p1675_p1 = scmp.lt.s32.totalorder %s1669_s5, %s1669_s5 }
  0x42   :  { %p1676_p2 = por %p1675_p1, %p1674_p0 }
  0x44   :  { %p1677_p3 = pnand %p1676_p2, %p1670_p13 }
  0x46   :  { %1680 = shalt.err (!%p1677_p3)
}
  0x47   :  { %110 = dma.hbm_to_vmem [thread:$0]  %s2164_s7, 2048, %s105_s20, [#allocation15], %s1872_s27, %s1872_s27, %s1873_s28  }
  0x48   :  { %s1681_s16 = scalar_lea.hbm %s2166_s9, 2048 }
  0x49   :  { %p1682_p4 = scmp.ne.s32.totalorder %s2166_s9, %s1681_s16  ;;  %p1685_p5 = scmp.lt.u32.totalorder %s1681_s16, %s2166_s9 }
  0x4b   :  { %p1687_p6 = pnand %p1685_p5, %p1682_p4 }
  0x4d   :  { %1690 = shalt.err (!%p1687_p6)
}
  0x4e   :  { %s1691_s21 = scalar_lea.vmem %s127_s22, 2048  ;;  %p1696_p8 = scmp.lt.s32.totalorder %s127_s22, %s127_s22 }
  0x4f   :  { %p1692_p7 = scmp.ne.s32.totalorder %s127_s22, %s1691_s21  ;;  %p1697_p9 = scmp.lt.s32.totalorder %s1691_s21, %s1691_s21 }
  0x51   :  { %p1698_p10 = por %p1697_p9, %p1696_p8 }
  0x53   :  { %p1699_p11 = pnand %p1698_p10, %p1692_p7 }
  0x55   :  { %1702 = shalt.err (!%p1699_p11)
}
  0x56   :  { %132 = dma.hbm_to_vmem [thread:$0]  %s2166_s9, 2048, %s127_s22, [#allocation18], %s1872_s27, %s1872_s27, %s1873_s28  }
  0x57   :  { %s1878_s23 = smov [#allocation2]   ;;  %s1879_s18 = smov [#allocation7]  }
  0x58   :  { %s29_s1 = sshll.u32 %s1878_s23, 4  ;;  %s51_s24 = sshll.u32 %s1879_s18, 4  ;;  %s30_s1 = int_to_ptr.vmem [resolvable:$true] %s29_s1  ;;  %s52_s24 = int_to_ptr.vmem [resolvable:$true] %s51_s24 }
  0x59   :  { %s1703_s29 = scalar_lea.hbm %s2157_s0, 896 }
  0x5a   :  { %p1704_p12 = scmp.ne.s32.totalorder %s2157_s0, %s1703_s29  ;;  %p1707_p13 = scmp.lt.u32.totalorder %s1703_s29, %s2157_s0 }
  0x5c   :  { %p1709_p0 = pnand %p1707_p13, %p1704_p12 }
  0x5e   :  { %1712 = shalt.err (!%p1709_p0)
}
  0x5f   :  { %s1713_s9 = scalar_lea.vmem %s30_s1, 896  ;;  %p1718_p2 = scmp.lt.s32.totalorder %s30_s1, %s30_s1 }
  0x60   :  { %p1714_p1 = scmp.ne.s32.totalorder %s30_s1, %s1713_s9  ;;  %p1719_p3 = scmp.lt.s32.totalorder %s1713_s9, %s1713_s9 }
  0x62   :  { %p1720_p4 = por %p1719_p3, %p1718_p2 }
  0x64   :  { %p1721_p5 = pnand %p1720_p4, %p1714_p1 }
  0x66   :  { %1724 = shalt.err (!%p1721_p5)
}
  0x67   :  { %32 = dma.hbm_to_vmem [thread:$0]  %s2157_s0, 896, %s30_s1, [#allocation3]  }
  0x68   :  { %s1725_s16 = scalar_lea.hbm %s2159_s2, 16 }
  0x69   :  { %p1726_p6 = scmp.ne.s32.totalorder %s2159_s2, %s1725_s16  ;;  %p1729_p7 = scmp.lt.u32.totalorder %s1725_s16, %s2159_s2 }
  0x6b   :  { %p1731_p8 = pnand %p1729_p7, %p1726_p6 }
  0x6d   :  { %1734 = shalt.err (!%p1731_p8)
}
  0x6e   :  { %s1735_s21 = scalar_lea.vmem %s52_s24, 16  ;;  %s1739_s7 = scalar_lea.vmem %s52_s24, 32 }
  0x6f   :  { %p1736_p9 = scmp.ne.s32.totalorder %s52_s24, %s1735_s21  ;;  %p1740_p10 = scmp.lt.s32.totalorder %s52_s24, %s52_s24 }
  0x70   :  { %p1741_p11 = scmp.lt.s32.totalorder %s1739_s7, %s1735_s21 }
  0x72   :  { %p1742_p12 = por %p1741_p11, %p1740_p10 }
  0x74   :  { %p1743_p13 = pnand %p1742_p12, %p1736_p9 }
  0x76   :  { %1746 = shalt.err (!%p1743_p13)
}
  0x77   :  { %54 = dma.hbm_to_vmem [thread:$0]  %s2159_s2, 16, %s52_s24, [#allocation6]  }
  0x78   :  { %s1880_s23 = smov [#allocation10]   ;;  %s1881_s18 = smov [#allocation13]  }
  0x79   :  { %s73_s1 = sshll.u32 %s1880_s23, 4  ;;  %s95_s25 = sshll.u32 %s1881_s18, 4  ;;  %s74_s1 = int_to_ptr.vmem [resolvable:$true] %s73_s1  ;;  %s96_s25 = int_to_ptr.vmem [resolvable:$true] %s95_s25 }
  0x7a   :  { %s1747_s5 = scalar_lea.hbm %s2161_s4, 16 }
  0x7b   :  { %p1748_p0 = scmp.ne.s32.totalorder %s2161_s4, %s1747_s5  ;;  %p1751_p1 = scmp.lt.u32.totalorder %s1747_s5, %s2161_s4 }
  0x7d   :  { %p1753_p2 = pnand %p1751_p1, %p1748_p0 }
  0x7f   :  { %1756 = shalt.err (!%p1753_p2)
}
  0x80   :  { %s1757_s2 = scalar_lea.vmem %s74_s1, 16  ;;  %s1761_s24 = scalar_lea.vmem %s74_s1, 32 }
  0x81   :  { %p1758_p3 = scmp.ne.s32.totalorder %s74_s1, %s1757_s2  ;;  %p1762_p4 = scmp.lt.s32.totalorder %s74_s1, %s74_s1 }
  0x82   :  { %p1763_p5 = scmp.lt.s32.totalorder %s1761_s24, %s1757_s2 }
  0x84   :  { %p1764_p6 = por %p1763_p5, %p1762_p4 }
  0x86   :  { %p1765_p7 = pnand %p1764_p6, %p1758_p3 }
  0x88   :  { %1768 = shalt.err (!%p1765_p7)
}
  0x89   :  { %76 = dma.hbm_to_vmem [thread:$0]  %s2161_s4, 16, %s74_s1, [#allocation9]  }
  0x8a   :  { %s1769_s16 = scalar_lea.hbm %s2163_s6, 16 }
  0x8b   :  { %p1770_p8 = scmp.ne.s32.totalorder %s2163_s6, %s1769_s16  ;;  %p1773_p9 = scmp.lt.u32.totalorder %s1769_s16, %s2163_s6 }
  0x8d   :  { %p1775_p10 = pnand %p1773_p9, %p1770_p8 }
  0x8f   :  { %1778 = shalt.err (!%p1775_p10)
}
  0x90   :  { %s1779_s21 = scalar_lea.vmem %s96_s25, 16  ;;  %s1783_s7 = scalar_lea.vmem %s96_s25, 32 }
  0x91   :  { %p1780_p11 = scmp.ne.s32.totalorder %s96_s25, %s1779_s21  ;;  %p1784_p12 = scmp.lt.s32.totalorder %s96_s25, %s96_s25 }
  0x92   :  { %p1785_p13 = scmp.lt.s32.totalorder %s1783_s7, %s1779_s21 }
  0x94   :  { %p1786_p0 = por %p1785_p13, %p1784_p12 }
  0x96   :  { %p1787_p1 = pnand %p1786_p0, %p1780_p11 }
  0x98   :  { %1790 = shalt.err (!%p1787_p1)
}
  0x99   :  { %98 = dma.hbm_to_vmem [thread:$0]  %s2163_s6, 16, %s96_s25, [#allocation12]  }
  0x9a   :  { %s1882_s20 = smov [#allocation16]   ;;  %s1883_s1 = smov [#allocation19]  }
  0x9b   :  { %s117_s23 = sshll.u32 %s1882_s20, 4  ;;  %s139_s18 = sshll.u32 %s1883_s1, 4  ;;  %s118_s23 = int_to_ptr.vmem [resolvable:$true] %s117_s23  ;;  %s140_s18 = int_to_ptr.vmem [resolvable:$true] %s139_s18 }
  0x9c   :  { %s1791_s5 = scalar_lea.hbm %s2165_s8, 16 }
  0x9d   :  { %p1792_p2 = scmp.ne.s32.totalorder %s2165_s8, %s1791_s5  ;;  %p1795_p3 = scmp.lt.u32.totalorder %s1791_s5, %s2165_s8 }
  0x9f   :  { %p1797_p4 = pnand %p1795_p3, %p1792_p2 }
  0xa1   :  { %1800 = shalt.err (!%p1797_p4)
}
  0xa2   :  { %s1801_s6 = scalar_lea.vmem %s118_s23, 16  ;;  %s1805_s25 = scalar_lea.vmem %s118_s23, 32 }
  0xa3   :  { %p1802_p5 = scmp.ne.s32.totalorder %s118_s23, %s1801_s6  ;;  %p1806_p6 = scmp.lt.s32.totalorder %s118_s23, %s118_s23 }
  0xa4   :  { %p1807_p7 = scmp.lt.s32.totalorder %s1805_s25, %s1801_s6 }
  0xa6   :  { %p1808_p8 = por %p1807_p7, %p1806_p6 }
  0xa8   :  { %p1809_p9 = pnand %p1808_p8, %p1802_p5 }
  0xaa   :  { %1812 = shalt.err (!%p1809_p9)
}
  0xab   :  { %120 = dma.hbm_to_vmem [thread:$0]  %s2165_s8, 16, %s118_s23, [#allocation15]  }
  0xac   :  { %s1813_s22 = scalar_lea.hbm %s2167_s10, 16 }
  0xad   :  { %p1814_p10 = scmp.ne.s32.totalorder %s2167_s10, %s1813_s22  ;;  %p1817_p11 = scmp.lt.u32.totalorder %s1813_s22, %s2167_s10 }
  0xaf   :  { %p1819_p12 = pnand %p1817_p11, %p1814_p10 }
  0xb1   :  { %1822 = shalt.err (!%p1819_p12)
}
  0xb2   :  { %s1823_s13 = scalar_lea.vmem %s140_s18, 16  ;;  %s1827_s19 = scalar_lea.vmem %s140_s18, 32 }
  0xb3   :  { %p1824_p13 = scmp.ne.s32.totalorder %s140_s18, %s1823_s13  ;;  %p1828_p0 = scmp.lt.s32.totalorder %s140_s18, %s140_s18 }
  0xb4   :  { %p1829_p1 = scmp.lt.s32.totalorder %s1827_s19, %s1823_s13 }
  0xb6   :  { %p1830_p2 = por %p1829_p1, %p1828_p0 }
  0xb8   :  { %p1831_p3 = pnand %p1830_p2, %p1824_p13 }
  0xba   :  { %1834 = shalt.err (!%p1831_p3)
}
  0xbb   :  { %142 = dma.hbm_to_vmem [thread:$0]  %s2167_s10, 16, %s140_s18, [#allocation18]  }
  0xbc   :  { %1857 = dma.done.wait [#allocation3], 896  }
  0xbd   :  { %1858 = vsyncadd [#allocation3], 4294966400 }
  0xbe   :  { %1859 = dma.done.wait [#allocation6], 14352  }
  0xbf   :  { %1860 = vsyncadd [#allocation6], 4294952944 }
  0xc0   :  { %1861 = dma.done.wait [#allocation9], 2064  }
  0xc1   :  { %1862 = vsyncadd [#allocation9], 4294965232 }
  0xc2   :  { %1863 = dma.done.wait [#allocation12], 2064  }
  0xc3   :  { %1864 = vsyncadd [#allocation12], 4294965232 }
  0xc4   :  { %1865 = dma.done.wait [#allocation15], 2064  }
  0xc5   :  { %1866 = vsyncadd [#allocation15], 4294965232 }
  0xc6   :  { %1867 = dma.done.wait [#allocation18], 2064  }
  0xc7   :  { %1868 = vsyncadd [#allocation18], 4294965232  ;;  %v199_v0 = vld [vmem:[#allocation5 + $0x80] sm:$0xff]  ;;  %v200_v1 = vld [vmem:[#allocation5 + $0x88] sm:$0xff]  ;;  %vm1885_vm0 = vmmov 0   ;;  %s1887_s10 = smov [#allocation20]  }
  0xc8   :  { %v183_v2 = vld [vmem:[#allocation5] sm:$0xff]  ;;  %v1350_v3 = vpack.c.bf16 %v200_v1, %v199_v0  ;;  %v184_v4 = vld [vmem:[#allocation5 + $0x8] sm:$0xff]  ;;  %v201_v11 = vld [vmem:[#allocation5 + $0x90] sm:$0xff]  ;;  %s966_s7 = sshll.u32 %s1887_s10, 4  ;;  %s967_s7 = int_to_ptr.vmem [resolvable:$true] %s966_s7 }
  0xc9   :  { %v231_v5 = vld [vmem:[#allocation5 + $0x180] sm:$0xff]  ;;  %v232_v6 = vld [vmem:[#allocation5 + $0x188] sm:$0xff]  ;;  %v1352_v7 = vpack.c.bf16 %v184_v4, %v183_v2  ;;  %v202_v13 = vld [vmem:[#allocation5 + $0x98] sm:$0xff]  ;;  %s1835_s4 = scalar_lea.vmem %s967_s7, 128  ;;  %p1840_p5 = scmp.lt.s32.totalorder %s967_s7, %s967_s7 }
  0xca   :  { %v1382_v8 = vpack.c.bf16 %v232_v6, %v231_v5  ;;  %v215_v9 = vld [vmem:[#allocation5 + $0x100] sm:$0xff]  ;;  %v216_v10 = vld [vmem:[#allocation5 + $0x108] sm:$0xff]  ;;  %1351 = vmatprep.subr.bf16.mxu0 %v1350_v3  ;;  %v185_v14 = vld [vmem:[#allocation5 + $0x10] sm:$0xff]  ;;  %v1354_v16 = vpack.c.bf16 %v202_v13, %v201_v11  ;;  %p1836_p4 = scmp.ne.s32.totalorder %s967_s7, %s1835_s4  ;;  %p1841_p6 = scmp.lt.s32.totalorder %s1835_s4, %s1835_s4 }
  0xcb   :  { %v1384_v12 = vpack.c.bf16 %v216_v10, %v215_v9  ;;  %v186_v15 = vld [vmem:[#allocation5 + $0x18] sm:$0xff]  ;;  %1353 = vmatpush3.bf16.msra.mxu0 %v1352_v7  ;;  %v233_v18 = vld [vmem:[#allocation5 + $0x190] sm:$0xff]  ;;  %v203_v23 = vld [vmem:[#allocation5 + $0xa0] sm:$0xff] }
  0xcc   :  { %1383 = vmatprep.subr.bf16.mxu1 %v1382_v8  ;;  %v1356_v17 = vpack.c.bf16 %v186_v15, %v185_v14  ;;  %v234_v19 = vld [vmem:[#allocation5 + $0x198] sm:$0xff]  ;;  %v217_v20 = vld [vmem:[#allocation5 + $0x110] sm:$0xff]  ;;  %v204_v24 = vld [vmem:[#allocation5 + $0xa8] sm:$0xff]  ;;  %1355 = vmatprep.subr.bf16.mxu0 %v1354_v16  ;;  %p1842_p7 = por %p1841_p6, %p1840_p5 }
  0xcd   :  { %1385 = vmatpush3.bf16.msra.mxu1 %v1384_v12  ;;  %v1386_v21 = vpack.c.bf16 %v234_v19, %v233_v18  ;;  %v218_v22 = vld [vmem:[#allocation5 + $0x118] sm:$0xff]  ;;  %v1358_v26 = vpack.c.bf16 %v204_v24, %v203_v23  ;;  %v187_v27 = vld [vmem:[#allocation5 + $0x20] sm:$0xff]  ;;  %v188_v28 = vld [vmem:[#allocation5 + $0x28] sm:$0xff] }
  0xce   :  { %v1388_v25 = vpack.c.bf16 %v218_v22, %v217_v20  ;;  %v235_v29 = vld [vmem:[#allocation5 + $0x1a0] sm:$0xff]  ;;  %v236_v30 = vld [vmem:[#allocation5 + $0x1a8] sm:$0xff]  ;;  %v1360_v33 = vpack.c.bf16 %v188_v28, %v187_v27  ;;  %v205_v35 = vld [vmem:[#allocation5 + $0xb0] sm:$0xff]  ;;  %p1843_p8 = pnand %p1842_p7, %p1836_p4 }
  0xcf   :  { %1387 = vmatprep.subr.bf16.mxu1 %v1386_v21  ;;  %v219_v31 = vld [vmem:[#allocation5 + $0x120] sm:$0xff]  ;;  %v220_v32 = vld [vmem:[#allocation5 + $0x128] sm:$0xff]  ;;  %1357 = vmatpush3.bf16.msra.mxu0 %v1356_v17  ;;  %v1390_v34 = vpack.c.bf16 %v236_v30, %v235_v29  ;;  %v206_v36 = vld [vmem:[#allocation5 + $0xb8] sm:$0xff] }
  0xd0   :  { %v189_v37 = vld [vmem:[#allocation5 + $0x30] sm:$0xff]  ;;  %1359 = vmatprep.subr.bf16.mxu0 %v1358_v26  ;;  %v1392_v38 = vpack.c.bf16 %v220_v32, %v219_v31  ;;  %v1362_v39 = vpack.c.bf16 %v206_v36, %v205_v35  ;;  %v190_v40 = vld [vmem:[#allocation5 + $0x38] sm:$0xff]  ;;  %v207_v46 = vld [vmem:[#allocation5 + $0xc0] sm:$0xff] }
  0xd1   :  { %1389 = vmatpush3.bf16.msra.mxu1 %v1388_v25  ;;  %v237_v41 = vld [vmem:[#allocation5 + $0x1b0] sm:$0xff]  ;;  %v238_v42 = vld [vmem:[#allocation5 + $0x1b8] sm:$0xff]  ;;  %v208_v47 = vld [vmem:[#allocation5 + $0xc8] sm:$0xff]  ;;  %v1364_v48 = vpack.c.bf16 %v190_v40, %v189_v37 }
  0xd2   :  { %1391 = vmatprep.subr.bf16.mxu1 %v1390_v34  ;;  %v1394_v43 = vpack.c.bf16 %v238_v42, %v237_v41  ;;  %v221_v44 = vld [vmem:[#allocation5 + $0x130] sm:$0xff]  ;;  %v222_v45 = vld [vmem:[#allocation5 + $0x138] sm:$0xff]  ;;  %v239_v49 = vld [vmem:[#allocation5 + $0x1c0] sm:$0xff]  ;;  %v1366_v52 = vpack.c.bf16 %v208_v47, %v207_v46 }
  0xd3   :  { %1361 = vmatpush3.bf16.msra.mxu0 %v1360_v33  ;;  %v240_v50 = vld [vmem:[#allocation5 + $0x1c8] sm:$0xff]  ;;  %v1396_v51 = vpack.c.bf16 %v222_v45, %v221_v44  ;;  %v191_v53 = vld [vmem:[#allocation5 + $0x40] sm:$0xff]  ;;  %v209_v58 = vld [vmem:[#allocation5 + $0xd0] sm:$0xff] }
  0xd4   :  { %1363 = vmatprep.subr.bf16.mxu0 %v1362_v39  ;;  %v192_v54 = vld [vmem:[#allocation5 + $0x48] sm:$0xff]  ;;  %v223_v55 = vld [vmem:[#allocation5 + $0x140] sm:$0xff]  ;;  %v1398_v56 = vpack.c.bf16 %v240_v50, %v239_v49  ;;  %v210_v59 = vld [vmem:[#allocation5 + $0xd8] sm:$0xff] }
  0xd5   :  { %1393 = vmatpush3.bf16.msra.mxu1 %v1392_v38  ;;  %v224_v57 = vld [vmem:[#allocation5 + $0x148] sm:$0xff]  ;;  %v241_v60 = vld [vmem:[#allocation5 + $0x1d0] sm:$0xff]  ;;  %v242_v61 = vld [vmem:[#allocation5 + $0x1d8] sm:$0xff]  ;;  %v1368_v62 = vpack.c.bf16 %v192_v54, %v191_v53  ;;  %v1370_v0 = vpack.c.bf16 %v210_v59, %v209_v58 }
  0xd6   :  { %1395 = vmatprep.subr.bf16.mxu1 %v1394_v43  ;;  %v1400_v63 = vpack.c.bf16 %v224_v57, %v223_v55  ;;  %v193_v1 = vld [vmem:[#allocation5 + $0x50] sm:$0xff]  ;;  %v194_v2 = vld [vmem:[#allocation5 + $0x58] sm:$0xff]  ;;  %v1402_v4 = vpack.c.bf16 %v242_v61, %v241_v60  ;;  %v211_v6 = vld [vmem:[#allocation5 + $0xe0] sm:$0xff] }
  0xd7   :  { %1365 = vmatpush3.bf16.msra.mxu0 %v1364_v48  ;;  %v225_v3 = vld [vmem:[#allocation5 + $0x150] sm:$0xff]  ;;  %v226_v5 = vld [vmem:[#allocation5 + $0x158] sm:$0xff]  ;;  %v212_v7 = vld [vmem:[#allocation5 + $0xe8] sm:$0xff]  ;;  %v1372_v10 = vpack.c.bf16 %v194_v2, %v193_v1  ;;  %v1886_v1 = vmov 0.0  }
  0xd8   :  { %1367 = vmatprep.subr.bf16.mxu0 %v1366_v52  ;;  %v243_v8 = vld [vmem:[#allocation5 + $0x1e0] sm:$0xff]  ;;  %v244_v9 = vld [vmem:[#allocation5 + $0x1e8] sm:$0xff]  ;;  %v177_v12 = vld [vmem:[#allocation2 + $0x8] sm:$0xff]  ;;  %v1404_v13 = vpack.c.bf16 %v226_v5, %v225_v3  ;;  %v1374_v14 = vpack.c.bf16 %v212_v7, %v211_v6 }
  0xd9   :  { %1397 = vmatpush3.bf16.msra.mxu1 %v1396_v51  ;;  %v195_v11 = vld [vmem:[#allocation5 + $0x60] sm:$0xff]  ;;  %v196_v15 = vld [vmem:[#allocation5 + $0x68] sm:$0xff]  ;;  %v1406_v18 = vpack.c.bf16 %v244_v9, %v243_v8  ;;  %v213_v19 = vld [vmem:[#allocation5 + $0xf0] sm:$0xff]  ;;  %366 = vmatprep.mubr.f32.mxu0 %v177_v12  ;;  %v1884_v51 = vmov 0.0|0.0  }
  0xda   :  { %1399 = vmatprep.subr.bf16.mxu1 %v1398_v56  ;;  %v227_v16 = vld [vmem:[#allocation5 + $0x160] sm:$0xff]  ;;  %v228_v17 = vld [vmem:[#allocation5 + $0x168] sm:$0xff]  ;;  %v214_v20 = vld [vmem:[#allocation5 + $0xf8] sm:$0xff]  ;;  %v1376_v24 = vpack.c.bf16 %v196_v15, %v195_v11 }
  0xdb   :  { %1369 = vmatpush3.bf16.msra.mxu0 %v1368_v62  ;;  %v179_v21 = vld [vmem:[#allocation2 + $0x18] sm:$0xff]  ;;  %v245_v22 = vld [vmem:[#allocation5 + $0x1f0] sm:$0xff]  ;;  %v246_v23 = vld [vmem:[#allocation5 + $0x1f8] sm:$0xff]  ;;  %v1408_v25 = vpack.c.bf16 %v228_v17, %v227_v16  ;;  %v1378_v26 = vpack.c.bf16 %v214_v20, %v213_v19 }
  0xdc   :  { %1371 = vmatprep.subr.bf16.mxu0 %v1370_v0  ;;  %436 = vmatprep.mubr.f32.mxu1 %v179_v21  ;;  %v197_v27 = vld [vmem:[#allocation5 + $0x70] sm:$0xff]  ;;  %v198_v28 = vld [vmem:[#allocation5 + $0x78] sm:$0xff]  ;;  %v1410_v30 = vpack.c.bf16 %v246_v23, %v245_v22  ;;  %v263_v32 = vld [vmem:[#allocation5 + $0x280] sm:$0xff] }
  0xdd   :  { %1401 = vmatpush3.bf16.msra.mxu1 %v1400_v63  ;;  %v229_v29 = vld [vmem:[#allocation5 + $0x170] sm:$0xff]  ;;  %v230_v31 = vld [vmem:[#allocation5 + $0x178] sm:$0xff]  ;;  %v264_v33 = vld [vmem:[#allocation5 + $0x288] sm:$0xff]  ;;  %v1380_v34 = vpack.c.bf16 %v198_v28, %v197_v27 }
  0xde   :  { %1403 = vmatprep.subr.bf16.mxu1 %v1402_v4  ;;  %v1412_v35 = vpack.c.bf16 %v230_v31, %v229_v29  ;;  %v1414_v36 = vpack.c.bf16 %v264_v33, %v263_v32  ;;  %v247_v37 = vld [vmem:[#allocation5 + $0x200] sm:$0xff]  ;;  %v248_v38 = vld [vmem:[#allocation5 + $0x208] sm:$0xff]  ;;  %v265_v39 = vld [vmem:[#allocation5 + $0x290] sm:$0xff] }
  0xdf   :  { %1373 = vmatpush3.bf16.msra.mxu0 %v1372_v10  ;;  %v266_v40 = vld [vmem:[#allocation5 + $0x298] sm:$0xff]  ;;  %v279_v41 = vld [vmem:[#allocation5 + $0x300] sm:$0xff]  ;;  %v280_v42 = vld [vmem:[#allocation5 + $0x308] sm:$0xff]  ;;  %v1416_v44 = vpack.c.bf16 %v248_v38, %v247_v37 }
  0xe0   :  { %1375 = vmatprep.subr.bf16.mxu0 %v1374_v14  ;;  %v176_v43 = vld [vmem:[#allocation2] sm:$0xff]  ;;  %v178_v45 = vld [vmem:[#allocation2 + $0x10] sm:$0xff]  ;;  %v1418_v46 = vpack.c.bf16 %v266_v40, %v265_v39  ;;  %v249_v47 = vld [vmem:[#allocation5 + $0x210] sm:$0xff]  ;;  %v1447_v49 = vpack.c.bf16 %v280_v42, %v279_v41 }
  0xe1   :  { %1405 = vmatpush3.bf16.msra.mxu1 %v1404_v13  ;;  %v250_v48 = vld [vmem:[#allocation5 + $0x218] sm:$0xff]  ;;  %v267_v50 = vld [vmem:[#allocation5 + $0x2a0] sm:$0xff]  ;;  %v268_v52 = vld [vmem:[#allocation5 + $0x2a8] sm:$0xff] }
  0xe2   :  { %1407 = vmatprep.subr.bf16.mxu1 %v1406_v18  ;;  %v281_v53 = vld [vmem:[#allocation5 + $0x310] sm:$0xff]  ;;  %v282_v54 = vld [vmem:[#allocation5 + $0x318] sm:$0xff]  ;;  %v1420_v55 = vpack.c.bf16 %v250_v48, %v249_v47  ;;  %v251_v56 = vld [vmem:[#allocation5 + $0x220] sm:$0xff]  ;;  %v1422_v57 = vpack.c.bf16 %v268_v52, %v267_v50 }
  0xe3   :  { %1377 = vmatpush3.bf16.msra.mxu0 %v1376_v24  ;;  %v252_v58 = vld [vmem:[#allocation5 + $0x228] sm:$0xff]  ;;  %v1450_v59 = vpack.c.bf16 %v282_v54, %v281_v53  ;;  %v269_v60 = vld [vmem:[#allocation5 + $0x2b0] sm:$0xff]  ;;  %v270_v61 = vld [vmem:[#allocation5 + $0x2b8] sm:$0xff] }
  0xe4   :  { %1379 = vmatprep.subr.bf16.mxu0 %v1378_v26  ;;  %v283_v62 = vld [vmem:[#allocation5 + $0x320] sm:$0xff]  ;;  %v284_v63 = vld [vmem:[#allocation5 + $0x328] sm:$0xff]  ;;  %v181_v0 = vld [vmem:[#allocation2 + $0x28] sm:$0xff]  ;;  %v1424_v2 = vpack.c.bf16 %v252_v58, %v251_v56  ;;  %v1426_v3 = vpack.c.bf16 %v270_v61, %v269_v60 }
  0xe5   :  { %1409 = vmatpush3.bf16.msra.mxu1 %v1408_v25  ;;  %v253_v4 = vld [vmem:[#allocation5 + $0x230] sm:$0xff]  ;;  %v254_v5 = vld [vmem:[#allocation5 + $0x238] sm:$0xff]  ;;  %v1453_v6 = vpack.c.bf16 %v284_v63, %v283_v62  ;;  %v271_v7 = vld [vmem:[#allocation5 + $0x2c0] sm:$0xff] }
  0xe6   :  { %1411 = vmatprep.subr.bf16.mxu1 %v1410_v30  ;;  %v272_v8 = vld [vmem:[#allocation5 + $0x2c8] sm:$0xff]  ;;  %v285_v9 = vld [vmem:[#allocation5 + $0x330] sm:$0xff]  ;;  %v286_v10 = vld [vmem:[#allocation5 + $0x338] sm:$0xff]  ;;  %v1428_v11 = vpack.c.bf16 %v254_v5, %v253_v4 }
  0xe7   :  { %1381 = vmatpush3.bf16.msra.mxu0 %v1380_v34  ;;  %v1430_v12 = vpack.c.bf16 %v272_v8, %v271_v7  ;;  %v255_v13 = vld [vmem:[#allocation5 + $0x240] sm:$0xff]  ;;  %v256_v14 = vld [vmem:[#allocation5 + $0x248] sm:$0xff]  ;;  %v1456_v15 = vpack.c.bf16 %v286_v10, %v285_v9  ;;  %v273_v16 = vld [vmem:[#allocation5 + $0x2d0] sm:$0xff] }
  0xe8   :  { %1415 = vmatprep.subr.bf16.mxu0 %v1414_v36  ;;  %v274_v17 = vld [vmem:[#allocation5 + $0x2d8] sm:$0xff]  ;;  %v287_v18 = vld [vmem:[#allocation5 + $0x340] sm:$0xff]  ;;  %v288_v19 = vld [vmem:[#allocation5 + $0x348] sm:$0xff]  ;;  %v1432_v20 = vpack.c.bf16 %v256_v14, %v255_v13 }
  0xe9   :  { %1413 = vmatpush3.bf16.msra.mxu1 %v1412_v35  ;;  %v1434_v21 = vpack.c.bf16 %v274_v17, %v273_v16  ;;  %v257_v22 = vld [vmem:[#allocation5 + $0x250] sm:$0xff]  ;;  %v258_v23 = vld [vmem:[#allocation5 + $0x258] sm:$0xff]  ;;  %v1459_v24 = vpack.c.bf16 %v288_v19, %v287_v18  ;;  %v275_v25 = vld [vmem:[#allocation5 + $0x2e0] sm:$0xff] }
  0xea   :  { %1446 = vmatprep.subr.bf16.mxu1 %v1884_v51  ;;  %367 = vmatmul.mubr.f32.vlgmr.msra.gmra.mrb[0].mxu0 %v176_v43  ;;  %v276_v26 = vld [vmem:[#allocation5 + $0x2e8] sm:$0xff]  ;;  %v289_v27 = vld [vmem:[#allocation5 + $0x350] sm:$0xff]  ;;  %v290_v28 = vld [vmem:[#allocation5 + $0x358] sm:$0xff]  ;;  %v1436_v29 = vpack.c.bf16 %v258_v23, %v257_v22 }
  0xeb   :  { %1417 = vmatpush3.bf16.msra.mxu0 %v1416_v44  ;;  %506 = vmatprep.mubr.f32.mxu0 %v181_v0  ;;  %v1438_v30 = vpack.c.bf16 %v276_v26, %v275_v25  ;;  %v259_v31 = vld [vmem:[#allocation5 + $0x260] sm:$0xff]  ;;  %v260_v32 = vld [vmem:[#allocation5 + $0x268] sm:$0xff]  ;;  %v1462_v33 = vpack.c.bf16 %v290_v28, %v289_v27  ;;  %v277_v34 = vld [vmem:[#allocation5 + $0x2f0] sm:$0xff] }
  0xec   :  { %437 = vmatmul.mubr.f32.vlgmr.msra.gmra.mrb[0].mxu1 %v178_v45  ;;  %1419 = vmatprep.subr.bf16.mxu0 %v1418_v46  ;;  %v278_v35 = vld [vmem:[#allocation5 + $0x2f8] sm:$0xff]  ;;  %v291_v36 = vld [vmem:[#allocation5 + $0x360] sm:$0xff]  ;;  %v292_v37 = vld [vmem:[#allocation5 + $0x368] sm:$0xff]  ;;  %v1440_v38 = vpack.c.bf16 %v260_v32, %v259_v31 }
  0xed   :  { %1448 = vmatpush3.bf16.msra.mxu1 %v1447_v49  ;;  %1207 = vmatprep.mubr.msk.f32.mxu1 %vm1885_vm0, %v1886_v1  ;;  %v1442_v39 = vpack.c.bf16 %v278_v35, %v277_v34  ;;  %v261_v40 = vld [vmem:[#allocation5 + $0x270] sm:$0xff]  ;;  %v262_v41 = vld [vmem:[#allocation5 + $0x278] sm:$0xff]  ;;  %v1465_v42 = vpack.c.bf16 %v292_v37, %v291_v36  ;;  %v180_v47 = vld [vmem:[#allocation2 + $0x20] sm:$0xff] }
  0xee   :  { %1449 = vmatprep.subr.bf16.mxu1 %v1884_v51  ;;  %v293_v43 = vld [vmem:[#allocation5 + $0x370] sm:$0xff]  ;;  %v294_v44 = vld [vmem:[#allocation5 + $0x378] sm:$0xff]  ;;  %v1444_v45 = vpack.c.bf16 %v262_v41, %v261_v40  ;;  %v583_v49 = vld [vmem:[#allocation8] sm:$0xff] }
  0xef   :  { %1421 = vmatpush3.bf16.msra.mxu0 %v1420_v55  ;;  %v1468_v46 = vpack.c.bf16 %v294_v44, %v293_v43  ;;  %v182_v48 = vld [vmem:[#allocation2 + $0x30] sm:$0xff]  ;;  %v584_v50 = vld [vmem:[#allocation8 + $0x8] sm:$0xff]  ;;  %v587_v56 = vld [vmem:[#allocation8 + $0x20] sm:$0xff] }
  0xf0   :  { %1423 = vmatprep.subr.bf16.mxu0 %v1422_v57  ;;  %v585_v52 = vld [vmem:[#allocation8 + $0x10] sm:$0xff]  ;;  %v1471_v53 = vpack.c.bf16 %v584_v50, %v583_v49  ;;  %v586_v54 = vld [vmem:[#allocation8 + $0x18] sm:$0xff]  ;;  %v588_v57 = vld [vmem:[#allocation8 + $0x28] sm:$0xff] }
  0xf1   :  { %1451 = vmatpush3.bf16.msra.mxu1 %v1450_v59  ;;  %v1474_v55 = vpack.c.bf16 %v586_v54, %v585_v52  ;;  %v1477_v58 = vpack.c.bf16 %v588_v57, %v587_v56  ;;  %v589_v59 = vld [vmem:[#allocation8 + $0x30] sm:$0xff]  ;;  %v590_v60 = vld [vmem:[#allocation8 + $0x38] sm:$0xff]  ;;  %v591_v62 = vld [vmem:[#allocation8 + $0x40] sm:$0xff] }
  0xf2   :  { %1452 = vmatprep.subr.bf16.mxu1 %v1884_v51  ;;  %v1480_v61 = vpack.c.bf16 %v590_v60, %v589_v59  ;;  %v592_v63 = vld [vmem:[#allocation8 + $0x48] sm:$0xff]  ;;  %v595_v5 = vld [vmem:[#allocation8 + $0x60] sm:$0xff]  ;;  %v597_v8 = vld [vmem:[#allocation8 + $0x70] sm:$0xff] }
  0xf3   :  { %1425 = vmatpush3.bf16.msra.mxu0 %v1424_v2  ;;  %v1483_v0 = vpack.c.bf16 %v592_v63, %v591_v62  ;;  %v593_v2 = vld [vmem:[#allocation8 + $0x50] sm:$0xff]  ;;  %v598_v9 = vld [vmem:[#allocation8 + $0x78] sm:$0xff]  ;;  %v681_v17 = vld [vmem:[#allocation11 + $0x20] sm:$0xff] }
  0xf4   :  { %1427 = vmatprep.subr.bf16.mxu0 %v1426_v3  ;;  %v594_v3 = vld [vmem:[#allocation8 + $0x58] sm:$0xff]  ;;  %v1492_v10 = vpack.c.bf16 %v598_v9, %v597_v8  ;;  %v682_v18 = vld [vmem:[#allocation11 + $0x28] sm:$0xff]  ;;  %v685_v23 = vld [vmem:[#allocation11 + $0x40] sm:$0xff] }
  0xf5   :  { %1454 = vmatpush3.bf16.msra.mxu1 %v1453_v6  ;;  %v1486_v4 = vpack.c.bf16 %v594_v3, %v593_v2  ;;  %v596_v6 = vld [vmem:[#allocation8 + $0x68] sm:$0xff]  ;;  %v679_v13 = vld [vmem:[#allocation11 + $0x10] sm:$0xff]  ;;  %v1501_v19 = vpack.c.bf16 %v682_v18, %v681_v17  ;;  %v980_v27 = vld [vmem:[#allocation7] ss:$0 sm:$0xff] }
  0xf6   :  { %1455 = vmatprep.subr.bf16.mxu1 %v1884_v51  ;;  %v1489_v7 = vpack.c.bf16 %v596_v6, %v595_v5  ;;  %v687_v43 = vld [vmem:[#allocation11 + $0x50] sm:$0xff]  ;;  %v688_v44 = vld [vmem:[#allocation11 + $0x58] sm:$0xff]  ;;  %v775_v59 = vld [vmem:[#allocation14 + $0x20] sm:$0xff] }
  0xf7   :  { %1429 = vmatpush3.bf16.msra.mxu0 %v1428_v11  ;;  %v677_v11 = vld [vmem:[#allocation11] sm:$0xff]  ;;  %v691_v49 = vld [vmem:[#allocation11 + $0x70] sm:$0xff]  ;;  %v692_v50 = vld [vmem:[#allocation11 + $0x78] sm:$0xff] }
  0xf8   :  { %1431 = vmatprep.subr.bf16.mxu0 %v1430_v12  ;;  %v678_v12 = vld [vmem:[#allocation11 + $0x8] sm:$0xff]  ;;  %v1516_v52 = vpack.c.bf16 %v692_v50, %v691_v49  ;;  %v774_v57 = vld [vmem:[#allocation14 + $0x18] sm:$0xff]  ;;  %v777_v62 = vld [vmem:[#allocation14 + $0x30] sm:$0xff] }
  0xf9   :  { %1457 = vmatpush3.bf16.msra.mxu1 %v1456_v15  ;;  %v1495_v14 = vpack.c.bf16 %v678_v12, %v677_v11  ;;  %v680_v15 = vld [vmem:[#allocation11 + $0x18] sm:$0xff]  ;;  %v772_v54 = vld [vmem:[#allocation14 + $0x8] sm:$0xff]  ;;  %v779_v2 = vld [vmem:[#allocation14 + $0x40] sm:$0xff] }
  0xfa   :  { %1458 = vmatprep.subr.bf16.mxu1 %v1884_v51  ;;  %v1498_v16 = vpack.c.bf16 %v680_v15, %v679_v13  ;;  %v776_v60 = vld [vmem:[#allocation14 + $0x28] sm:$0xff]  ;;  %v778_v63 = vld [vmem:[#allocation14 + $0x38] sm:$0xff]  ;;  %v783_v13 = vld [vmem:[#allocation14 + $0x60] sm:$0xff] }
  0xfb   :  { %1433 = vmatpush3.bf16.msra.mxu0 %v1432_v20  ;;  %v683_v20 = vld [vmem:[#allocation11 + $0x30] sm:$0xff]  ;;  %v981_v5 = vld [vmem:[#allocation10] ss:$0 sm:$0xff] }
  0xfc   :  { %1435 = vmatprep.subr.bf16.mxu0 %v1434_v21  ;;  %v684_v21 = vld [vmem:[#allocation11 + $0x38] sm:$0xff]  ;;  %v780_v3 = vld [vmem:[#allocation14 + $0x48] sm:$0xff] }
  0xfd   :  { %1460 = vmatpush3.bf16.msra.mxu1 %v1459_v24  ;;  %v1504_v22 = vpack.c.bf16 %v684_v21, %v683_v20  ;;  %v686_v24 = vld [vmem:[#allocation11 + $0x48] sm:$0xff]  ;;  %v782_v11 = vld [vmem:[#allocation14 + $0x58] sm:$0xff] }
  0xfe   :  { %1461 = vmatprep.subr.bf16.mxu1 %v1884_v51  ;;  %v1507_v25 = vpack.c.bf16 %v686_v24, %v685_v23  ;;  %v786_v17 = vld [vmem:[#allocation14 + $0x78] sm:$0xff]  ;;  %v866_v20 = vld [vmem:[#allocation17 + $0x8] sm:$0xff]  ;;  %v869_v24 = vld [vmem:[#allocation17 + $0x20] sm:$0xff] }
  0xff   :  { %1437 = vmatpush3.bf16.msra.mxu0 %v1436_v29  ;;  %v867_v21 = vld [vmem:[#allocation17 + $0x10] sm:$0xff] }
 0x100   :  { %1439 = vmatprep.subr.bf16.mxu0 %v1438_v30 }
 0x101   :  { %1463 = vmatpush3.bf16.msra.mxu1 %v1462_v33 }
 0x102   :  { %1464 = vmatprep.subr.bf16.mxu1 %v1884_v51 }
 0x103   :  { %1441 = vmatpush3.bf16.msra.mxu0 %v1440_v38 }
 0x104   :  { %1443 = vmatprep.subr.bf16.mxu0 %v1442_v39 }
 0x105   :  { %1466 = vmatpush3.bf16.msra.mxu1 %v1465_v42 }
 0x106   :  { %1467 = vmatprep.subr.bf16.mxu1 %v1884_v51 }
 0x107   :  { %1445 = vmatpush3.bf16.msra.mxu0 %v1444_v45  ;;  %v1510_v45 = vpack.c.bf16 %v688_v44, %v687_v43  ;;  %v879_v44 = vld [vmem:[#allocation17 + $0x70] sm:$0xff] }
 0x108   :  { %1470 = vmatprep.subr.bf16.mxu0 %v1884_v51 }
 0x109   :  { %1469 = vmatpush3.bf16.msra.mxu1 %v1468_v46  ;;  %v689_v46 = vld [vmem:[#allocation11 + $0x60] sm:$0xff] }
 0x10a   :  { %1494 = vmatprep.subr.bf16.mxu1 %v1884_v51  ;;  %507 = vmatmul.mubr.f32.vlgmr.msra.gmra.mrb[2].mxu0 %v180_v47  ;;  %v690_v47 = vld [vmem:[#allocation11 + $0x68] sm:$0xff] }
 0x10b   :  { %1242 = vmatprep.mubr.msk.f32.mxu0 %vm1885_vm0, %v1886_v1  ;;  %1472 = vmatpush3.bf16.msra.mxu0 %v1471_v53  ;;  %v771_v53 = vld [vmem:[#allocation14] sm:$0xff] }
 0x10c   :  { %1208 = vmatmul.mubr.f32.vlgmr.msra.gmra.mrb[2].mxu1 %v182_v48  ;;  %1473 = vmatprep.subr.bf16.mxu0 %v1884_v51  ;;  %v1513_v48 = vpack.c.bf16 %v690_v47, %v689_v46  ;;  %v1519_v56 = vpack.c.bf16 %v772_v54, %v771_v53  ;;  %v983_v47 = vld [vmem:[#allocation16] ss:$0 sm:$0xff]  ;;  %v984_v53 = vld [vmem:[#allocation19] ss:$0 sm:$0xff] }
 0x10d   :  { %1277 = vmatprep.mubr.msk.f32.mxu1 %vm1885_vm0, %v1886_v1  ;;  %1496 = vmatpush3.bf16.msra.mxu1 %v1495_v14  ;;  %v784_v14 = vld [vmem:[#allocation14 + $0x68] sm:$0xff] }
 0x10e   :  { %1497 = vmatprep.subr.bf16.mxu1 %v1884_v51  ;;  %v1537_v15 = vpack.c.bf16 %v784_v14, %v783_v13 }
 0x10f   :  { %1475 = vmatpush3.bf16.msra.mxu0 %v1474_v55  ;;  %v773_v55 = vld [vmem:[#allocation14 + $0x10] sm:$0xff] }
 0x110   :  { %1476 = vmatprep.subr.bf16.mxu0 %v1884_v51 }
 0x111   :  { %1499 = vmatpush3.bf16.msra.mxu1 %v1498_v16  ;;  %v785_v16 = vld [vmem:[#allocation14 + $0x70] sm:$0xff] }
 0x112   :  { %1500 = vmatprep.subr.bf16.mxu1 %v1884_v51  ;;  %v1540_v18 = vpack.c.bf16 %v786_v17, %v785_v16 }
 0x113   :  { %1478 = vmatpush3.bf16.msra.mxu0 %v1477_v58  ;;  %v1522_v58 = vpack.c.bf16 %v774_v57, %v773_v55 }
 0x114   :  { %1479 = vmatprep.subr.bf16.mxu0 %v1884_v51 }
 0x115   :  { %1502 = vmatpush3.bf16.msra.mxu1 %v1501_v19  ;;  %v865_v19 = vld [vmem:[#allocation17] sm:$0xff] }
 0x116   :  { %1503 = vmatprep.subr.bf16.mxu1 %v1884_v51 }
 0x117   :  { %1481 = vmatpush3.bf16.msra.mxu0 %v1480_v61  ;;  %v1525_v61 = vpack.c.bf16 %v776_v60, %v775_v59 }
 0x118   :  { %1482 = vmatprep.subr.bf16.mxu0 %v1884_v51 }
 0x119   :  { %1505 = vmatpush3.bf16.msra.mxu1 %v1504_v22  ;;  %v868_v22 = vld [vmem:[#allocation17 + $0x18] sm:$0xff] }
 0x11a   :  { %1506 = vmatprep.subr.bf16.mxu1 %v1884_v51  ;;  %v1546_v23 = vpack.c.bf16 %v868_v22, %v867_v21 }
 0x11b   :  { %1484 = vmatpush3.bf16.msra.mxu0 %v1483_v0  ;;  %v1528_v0 = vpack.c.bf16 %v778_v63, %v777_v62 }
 0x11c   :  { %1485 = vmatprep.subr.bf16.mxu0 %v1884_v51 }
 0x11d   :  { %1508 = vmatpush3.bf16.msra.mxu1 %v1507_v25  ;;  %v870_v25 = vld [vmem:[#allocation17 + $0x28] sm:$0xff] }
 0x11e   :  { %1509 = vmatprep.subr.bf16.mxu1 %v1884_v51 }
 0x11f   :  { %1487 = vmatpush3.bf16.msra.mxu0 %v1486_v4  ;;  %v1531_v4 = vpack.c.bf16 %v780_v3, %v779_v2 }
 0x120   :  { %1488 = vmatprep.subr.bf16.mxu0 %v1884_v51 }
 0x121   :  { %1511 = vmatpush3.bf16.msra.mxu1 %v1510_v45  ;;  %v880_v45 = vld [vmem:[#allocation17 + $0x78] sm:$0xff] }
 0x122   :  { %1512 = vmatprep.subr.bf16.mxu1 %v1884_v51  ;;  %v1564_v46 = vpack.c.bf16 %v880_v45, %v879_v44 }
 0x123   :  { %1490 = vmatpush3.bf16.msra.mxu0 %v1489_v7 }
 0x124   :  { %1491 = vmatprep.subr.bf16.mxu0 %v1884_v51 }
 0x125   :  { %1514 = vmatpush3.bf16.msra.mxu1 %v1513_v48 }
 0x126   :  { %1515 = vmatprep.subr.bf16.mxu1 %v1884_v51 }
 0x127   :  { %1493 = vmatpush3.bf16.msra.mxu0 %v1492_v10  ;;  %v781_v10 = vld [vmem:[#allocation14 + $0x50] sm:$0xff] }
 0x128   :  { %1518 = vmatprep.subr.bf16.mxu0 %v1884_v51  ;;  %v1534_v12 = vpack.c.bf16 %v782_v11, %v781_v10 }
 0x129   :  { %1517 = vmatpush3.bf16.msra.mxu1 %v1516_v52 }
 0x12a   :  { %1542 = vmatprep.subr.bf16.mxu1 %v1884_v51 }
 0x1bd   :  { %v1017_v26 = vpop.f32.mrb[0].mxu0 }
 0x1be   :  { %v1018_v28 = vpop.f32.mrb[1].mxu0 }
 0x1bf   :  { %v1052_v29 = vpop.f32.mrb[0].mxu1  ;;  %v1019_v30 = vadd.f32 %v1018_v28, %v1017_v26  ;;  %v1549_v26 = vpack.c.bf16 %v870_v25, %v869_v24  ;;  %v872_v28 = vld [vmem:[#allocation17 + $0x38] sm:$0xff] }
 0x1c0   :  { %v1053_v31 = vpop.f32.mrb[1].mxu1 }
 0x1c1   :  { %v1054_v32 = vadd.f32 %v1053_v31, %v1052_v29  ;;  %v369_v33 = vadd.f32 %v1019_v30, %v980_v27  ;;  %v871_v27 = vld [vmem:[#allocation17 + $0x30] sm:$0xff]  ;;  %v873_v30 = vld [vmem:[#allocation17 + $0x40] sm:$0xff]  ;;  %v874_v31 = vld [vmem:[#allocation17 + $0x48] sm:$0xff] }
 0x1c2   :  { %v1552_v29 = vpack.c.bf16 %v872_v28, %v871_v27 }
 0x1c3   :  { %v439_v34 = vadd.f32 %v1054_v32, %v369_v33  ;;  %v1555_v32 = vpack.c.bf16 %v874_v31, %v873_v30  ;;  %v982_v33 = vld [vmem:[#allocation13] ss:$0 sm:$0xff] }
 0x1dd   :  { %v1087_v35 = vpop.f32.mrb[2].mxu0 }
 0x1de   :  { %v1088_v36 = vpop.f32.mrb[3].mxu0 }
 0x1df   :  { %v578_v37 = vpop.f32.mrb[2].mxu1  ;;  %v1089_v38 = vadd.f32 %v1088_v36, %v1087_v35 }
 0x1e0   :  { %v1209_v39 = vpop.f32.mrb[3].mxu1 }
 0x1e1   :  { %v509_v40 = vadd.f32 %v1089_v38, %v439_v34  ;;  %v875_v38 = vld [vmem:[#allocation17 + $0x50] sm:$0xff]  ;;  %v876_v39 = vld [vmem:[#allocation17 + $0x58] sm:$0xff] }
 0x1e3   :  { %v579_v41 = vadd.f32 %v578_v37, %v509_v40  ;;  %v1558_v40 = vpack.c.bf16 %v876_v39, %v875_v38 }
 0x1e5   :  { %1583 = vtanh.f32 %v579_v41  ;;  %v877_v41 = vld [vmem:[#allocation17 + $0x60] sm:$0xff] }
 0x1ef   :  { %v1584_v42 = vpop.eup %1583 }
 0x1f0   :  { %1243 = vmatmul.mubr.f32.vlgmr.msra.gmra.mrb[4].mxu0 %v1584_v42  ;;  %v878_v42 = vld [vmem:[#allocation17 + $0x68] sm:$0xff] }
 0x1f1   :  { %1312 = vmatprep.mubr.msk.f32.mxu0 %vm1885_vm0, %v1886_v1  ;;  %1520 = vmatpush3.bf16.msra.mxu0 %v1519_v56  ;;  %v1561_v43 = vpack.c.bf16 %v878_v42, %v877_v41 }
 0x1f2   :  { %1521 = vmatprep.subr.bf16.mxu0 %v1884_v51 }
 0x1f5   :  { %1523 = vmatpush3.bf16.msra.mxu0 %v1522_v58 }
 0x1f6   :  { %1524 = vmatprep.subr.bf16.mxu0 %v1884_v51 }
 0x1f9   :  { %1526 = vmatpush3.bf16.msra.mxu0 %v1525_v61 }
 0x1fa   :  { %1527 = vmatprep.subr.bf16.mxu0 %v1884_v51 }
 0x1fd   :  { %1529 = vmatpush3.bf16.msra.mxu0 %v1528_v0 }
 0x1fe   :  { %1530 = vmatprep.subr.bf16.mxu0 %v1884_v51 }
 0x201   :  { %1532 = vmatpush3.bf16.msra.mxu0 %v1531_v4 }
 0x202   :  { %1533 = vmatprep.subr.bf16.mxu0 %v1884_v51 }
 0x205   :  { %1535 = vmatpush3.bf16.msra.mxu0 %v1534_v12 }
 0x206   :  { %1536 = vmatprep.subr.bf16.mxu0 %v1884_v51 }
 0x209   :  { %1538 = vmatpush3.bf16.msra.mxu0 %v1537_v15 }
 0x20a   :  { %1539 = vmatprep.subr.bf16.mxu0 %v1884_v51 }
 0x20d   :  { %1541 = vmatpush3.bf16.msra.mxu0 %v1540_v18 }
 0x2c3   :  { %v672_v6 = vpop.f32.mrb[4].mxu0 }
 0x2c4   :  { %v673_v7 = vadd.f32 %v981_v5, %v672_v6  ;;  %v1244_v8 = vpop.f32.mrb[5].mxu0 }
 0x2c6   :  { %1585 = vtanh.f32 %v673_v7 }
 0x2d0   :  { %v1586_v9 = vpop.eup %1585 }
 0x2d1   :  { %1278 = vmatmul.mubr.f32.vlgmr.msra.gmra.mrb[4].mxu1 %v1586_v9 }
 0x2d2   :  { %1347 = vmatprep.mubr.msk.f32.mxu1 %vm1885_vm0, %v1886_v1  ;;  %v1543_v1 = vpack.c.bf16 %v866_v20, %v865_v19 }
 0x2d4   :  { %1544 = vmatpush3.bf16.msra.mxu1 %v1543_v1 }
 0x2d5   :  { %1545 = vmatprep.subr.bf16.mxu1 %v1884_v51 }
 0x2d8   :  { %1547 = vmatpush3.bf16.msra.mxu1 %v1546_v23 }
 0x2d9   :  { %1548 = vmatprep.subr.bf16.mxu1 %v1884_v51 }
 0x2dc   :  { %1550 = vmatpush3.bf16.msra.mxu1 %v1549_v26 }
 0x2dd   :  { %1551 = vmatprep.subr.bf16.mxu1 %v1884_v51 }
 0x2e0   :  { %1553 = vmatpush3.bf16.msra.mxu1 %v1552_v29 }
 0x2e1   :  { %1554 = vmatprep.subr.bf16.mxu1 %v1884_v51 }
 0x2e4   :  { %1556 = vmatpush3.bf16.msra.mxu1 %v1555_v32 }
 0x2e5   :  { %1557 = vmatprep.subr.bf16.mxu1 %v1884_v51 }
 0x2e8   :  { %1559 = vmatpush3.bf16.msra.mxu1 %v1558_v40 }
 0x2e9   :  { %1560 = vmatprep.subr.bf16.mxu1 %v1884_v51 }
 0x2ec   :  { %1562 = vmatpush3.bf16.msra.mxu1 %v1561_v43 }
 0x2ed   :  { %1563 = vmatprep.subr.bf16.mxu1 %v1884_v51 }
 0x2f0   :  { %1565 = vmatpush3.bf16.msra.mxu1 %v1564_v46 }
 0x3a4   :  { %v766_v34 = vpop.f32.mrb[4].mxu1 }
 0x3a5   :  { %v767_v35 = vadd.f32 %v982_v33, %v766_v34  ;;  %v1279_v36 = vpop.f32.mrb[5].mxu1 }
 0x3a7   :  { %1587 = vtanh.f32 %v767_v35 }
 0x3b1   :  { %v1588_v37 = vpop.eup %1587 }
 0x3b2   :  { %1313 = vmatmul.mubr.f32.vlgmr.msra.gmra.mrb[6].mxu0 %v1588_v37 }
 0x485   :  { %v860_v48 = vpop.f32.mrb[6].mxu0 }
 0x486   :  { %v861_v49 = vadd.f32 %v983_v47, %v860_v48  ;;  %v1314_v50 = vpop.f32.mrb[7].mxu0 }
 0x488   :  { %1589 = vtanh.f32 %v861_v49 }
 0x492   :  { %v1590_v52 = vpop.eup %1589 }
 0x493   :  { %1348 = vmatmul.mubr.f32.vlgmr.msra.gmra.mrb[6].mxu1 %v1590_v52 }
 0x566   :  { %v954_v54 = vpop.f32.mrb[6].mxu1 }
 0x567   :  { %v955_v55 = vadd.f32 %v984_v53, %v954_v54  ;;  %v1349_v56 = vpop.f32.mrb[7].mxu1 }
 0x569   :  { %1591 = vtanh.f32 %v955_v55 }
 0x573   :  { %v1592_v57 = vpop.eup %1591 }
 0x574   :  { %959 = vst [vmem:[#allocation20] sm:$0xff] %v1592_v57 }
 0x575   :  { %1846 = shalt.err (!%p1843_p8)
}
 0x576   :  { %s1847_s23 = scalar_lea.hbm %s2168_s11, 128 }
 0x577   :  { %p1848_p9 = scmp.ne.s32.totalorder %s2168_s11, %s1847_s23  ;;  %p1851_p10 = scmp.lt.u32.totalorder %s1847_s23, %s2168_s11 }
 0x579   :  { %p1853_p11 = pnand %p1851_p10, %p1848_p9 }
 0x57b   :  { %1856 = shalt.err (!%p1853_p11)
}
 0x57c   :  { %969 = dma.vmem_to_hbm [thread:$0]  %s967_s7, 128, %s2168_s11, [#allocation4]  }
 0x57d   :  { %1869 = dma.done.wait [#allocation4], 128  }
 0x57e   :  { %1870 = vsyncadd [#allocation4], 4294967168 }
 0x57f   :  { %973 = vsyncpa [#allocation3], 1 }
 0x580   :  { %974 = vsyncpa [#allocation6], 1 }
 0x581   :  { %975 = vsyncpa [#allocation9], 1 }
 0x582   :  { %976 = vsyncpa [#allocation12], 1 }
 0x583   :  { %977 = vsyncpa [#allocation15], 1 }
 0x584   :  { %978 = vsyncpa [#allocation18], 1 }
 0x585   :  { %979 = vsyncpa [#allocation4], 1 }

</bundles_post_ra>
